<compile_context>
chip_gen: v7x
topology: tpu7x:2x2x1
jax: 0.10.0
libtpu: 0.0.40
codegen_flags: <defaults>
</compile_context>

<pallas_src>
import functools

import jax
import jax.numpy as jnp
from jax.experimental import pallas as pl
from jax.experimental.pallas import tpu as pltpu


_LANES = 128


def _round_up(v, m):
    return ((v + m - 1) // m) * m


def _sublane_multiple(dtype):
    # Sub-32-bit dtypes pack 2/4 rows per sublane; round row blocks to the
    # dtype-native sublane multiple so accesses stay unmasked.
    itemsize = jnp.dtype(dtype).itemsize
    if itemsize >= 4:
        return 8
    if itemsize == 2:
        return 16
    return 32


def _vmem_budgets():
    """Returns (tile_budget_bytes, vmem_limit_bytes), generation-aware."""
    cap = None
    try:
        cap = getattr(pltpu.get_tpu_info(), "vmem_capacity_bytes", None)
    except Exception:
        cap = None
    if cap is None:
        cap = 64 * 1024 * 1024  # conservative default: v7x per-TC VMEM
    if cap <= 64 * 1024 * 1024:
        # v7x class (64 MiB/TC): leave headroom for compiler scratch.
        return 20 * 1024 * 1024, 48 * 1024 * 1024
    # v5e/v6e class (128 MiB): larger budget only matters for very wide H.
    return 48 * 1024 * 1024, 96 * 1024 * 1024


def _pick_block_rows(rows, hidden, dtype, tile_budget):
    """Row-tile size: capped by VMEM bytes (no fixed row cap); keeps >= ~8
    roughly equal grid steps when there is enough work, with a floor of ~512
    rows per block so per-grid-step overhead stays amortized."""
    dsize = jnp.dtype(dtype).itemsize
    sub = _sublane_multiple(dtype)
    # Per-row VMEM bytes: double-buffered input + output tiles (2x each) plus
    # ~5 full-tile f32 temporaries live inside the body (x, d, d*d, y, w*y+b).
    per_row = hidden * (4 * dsize + 5 * 4)
    byte_cap = max(sub, tile_budget // max(per_row, 1))

    target_steps = 8   # >= 4-8 balanced steps: pipelining + v7x 2-TC balance
    min_block = 512    # below this, the ~0.35us/step overhead dominates

    br = pl.cdiv(rows, target_steps)
    br = max(br, min_block)
    br = min(br, byte_cap)
    br = _round_up(br, sub)
    br = min(br, max(sub, (byte_cap // sub) * sub))  # never exceed byte cap
    br = min(br, _round_up(rows, sub))               # never exceed row count
    return max(sub, br)


def _layernorm_kernel(x_ref, p_ref, o_ref, *, eps):
    # General path. x_ref: (block_rows, H); p_ref: (2, H) f32 = [weight; bias].
    x = x_ref[...].astype(jnp.float32)
    u = jnp.mean(x, axis=-1, keepdims=True)
    d = x - u
    s = jnp.mean(d * d, axis=-1, keepdims=True)
    y = d * jax.lax.rsqrt(s + eps)               # eps inside sqrt (TF style)
    o_ref[...] = (p_ref[0:1, :] * y + p_ref[1:2, :]).astype(o_ref.dtype)


def _layernorm_packed_kernel(x_ref, p_ref, e_ref, o_ref, *, eps):
    # Lane-packed path: g = 128 // H rows per 128-lane group.
    # x_ref: (block_rows, 128); p_ref: (2, 128) f32 tiled [weight; bias];
    # e_ref: (128, 128) f32 segment-averaging matrix (block-diagonal, 1/H).
    x = x_ref[...].astype(jnp.float32)
    e = e_ref[...]
    # Per-segment mean / variance, broadcast back across each segment's lanes.
    u = jnp.dot(x, e, preferred_element_type=jnp.float32)
    d = x - u
    s = jnp.dot(d * d, e, preferred_element_type=jnp.float32)
    y = d * jax.lax.rsqrt(s + eps)
    o_ref[...] = (p_ref[0:1, :] * y + p_ref[1:2, :]).astype(o_ref.dtype)


def layer_norm(x, weight, bias, eps=1e-12, block_rows=None):
    """LayerNorm over the last axis of x, matching the PyTorch module exactly.

    NOTE: relies on Pallas dropping OOB output rows of the ragged last block;
    valid because the computation is strictly row-wise (no cross-row reduce).
    """
    orig_shape = x.shape
    hidden = orig_shape[-1]
    x2 = x.reshape(-1, hidden)
    rows = x2.shape[0]

    tile_budget, vmem_limit_bytes = _vmem_budgets()

    weight_f32 = weight.reshape(hidden).astype(jnp.float32)
    bias_f32 = bias.reshape(hidden).astype(jnp.float32)

    use_packed = hidden < _LANES and (_LANES % hidden == 0)
    # TODO(synk): hidden < 128 with 128 % hidden != 0 still takes the general
    # (lane-sparse) path; a pad-to-128-with-masked-mean variant would cover it.

    if use_packed:
        g = _LANES // hidden
        rows_padded = _round_up(rows, g)
        if rows_padded != rows:
            x2 = jnp.pad(x2, ((0, rows_padded - rows), (0, 0)))
        packed_rows = rows_padded // g
        xp = x2.reshape(packed_rows, _LANES)

        if block_rows is None:
            block_rows = _pick_block_rows(packed_rows, _LANES, x.dtype,
                                          tile_budget)

        params = jnp.stack(
            [jnp.tile(weight_f32, g), jnp.tile(bias_f32, g)], axis=0)
        seg = jnp.arange(_LANES, dtype=jnp.int32) // hidden
        e_mat = (seg[:, None] == seg[None, :]).astype(jnp.float32) / float(hidden)

        grid = (pl.cdiv(packed_rows, block_rows),)
        out = pl.pallas_call(
            functools.partial(_layernorm_packed_kernel, eps=eps),
            out_shape=jax.ShapeDtypeStruct((packed_rows, _LANES), x.dtype),
            grid_spec=pltpu.PrefetchScalarGridSpec(
                num_scalar_prefetch=0,
                grid=grid,
                in_specs=[
                    pl.BlockSpec((block_rows, _LANES), lambda i: (i, 0)),
                    pl.BlockSpec((2, _LANES), lambda i: (0, 0)),
                    pl.BlockSpec((_LANES, _LANES), lambda i: (0, 0)),
                ],
                out_specs=pl.BlockSpec((block_rows, _LANES), lambda i: (i, 0)),
            ),
            compiler_params=pltpu.CompilerParams(
                dimension_semantics=("parallel",),
                vmem_limit_bytes=vmem_limit_bytes,
            ),
        )(xp, params, e_mat)
        out = out.reshape(rows_padded, hidden)[:rows]
        return out.reshape(orig_shape)

    # General (lane-dense when hidden >= 128) path.
    if block_rows is None:
        block_rows = _pick_block_rows(rows, hidden, x.dtype, tile_budget)

    params = jnp.stack([weight_f32, bias_f32], axis=0)  # stays float32

    grid = (pl.cdiv(rows, block_rows),)
    out = pl.pallas_call(
        functools.partial(_layernorm_kernel, eps=eps),
        out_shape=jax.ShapeDtypeStruct((rows, hidden), x.dtype),
        grid_spec=pltpu.PrefetchScalarGridSpec(
            num_scalar_prefetch=0,
            grid=grid,
            in_specs=[
                pl.BlockSpec((block_rows, hidden), lambda i: (i, 0)),
                pl.BlockSpec((2, hidden), lambda i: (0, 0)),
            ],
            out_specs=pl.BlockSpec((block_rows, hidden), lambda i: (i, 0)),
        ),
        compiler_params=pltpu.CompilerParams(
            dimension_semantics=("parallel",),
            vmem_limit_bytes=vmem_limit_bytes,
        ),
    )(x2, params)

    return out.reshape(orig_shape)


def _reference_layer_norm(x, weight, bias, eps=1e-12):
    u = jnp.mean(x, axis=-1, keepdims=True)
    s = jnp.mean((x - u) ** 2, axis=-1, keepdims=True)
    xn = (x - u) / jnp.sqrt(s + eps)
    return weight * xn + bias


if __name__ == "__main__":
    key = jax.random.PRNGKey(0)

    # Deterministic parameter init matching nn.Parameter(torch.ones/zeros).
    batch, seq, hidden = 2, 8, 32
    weight = jnp.ones((hidden,), dtype=jnp.float32)
    bias = jnp.zeros((hidden,), dtype=jnp.float32)
    x = jax.random.normal(key, (batch, seq, hidden), dtype=jnp.float32)

    out = layer_norm(x, weight, bias, eps=1e-12)   # lane-packed path (H=32)
    out = jax.block_until_ready(out)
    ref = _reference_layer_norm(x, weight, bias, eps=1e-12)
    assert out.shape == x.shape
    assert jnp.allclose(out, ref, atol=1e-5, rtol=1e-5)

    # Second check: ragged row count (rows % block_rows != 0) on the general
    # lane-dense path (hidden multiple of 128).
    b2, s2, h2 = 3, 5, 128
    w2 = jnp.ones((h2,), dtype=jnp.float32)
    bz2 = jnp.zeros((h2,), dtype=jnp.float32)
    x2 = jax.random.normal(jax.random.PRNGKey(1), (b2, s2, h2), dtype=jnp.float32)
    out2 = jax.block_until_ready(layer_norm(x2, w2, bz2, eps=1e-12))
    ref2 = _reference_layer_norm(x2, w2, bz2, eps=1e-12)
    assert out2.shape == x2.shape
    assert jnp.allclose(out2, ref2, atol=1e-5, rtol=1e-5)

    # Third check: bf16 activations, odd row count, f32 params kept exact.
    b3, s3, h3 = 5, 7, 256
    w3 = jax.random.normal(jax.random.PRNGKey(2), (h3,), dtype=jnp.float32)
    bz3 = jax.random.normal(jax.random.PRNGKey(3), (h3,), dtype=jnp.float32)
    x3 = jax.random.normal(jax.random.PRNGKey(4), (b3, s3, h3), dtype=jnp.bfloat16)
    out3 = jax.block_until_ready(layer_norm(x3, w3, bz3, eps=1e-12))
    ref3 = _reference_layer_norm(x3.astype(jnp.float32), w3, bz3, eps=1e-12)
    assert out3.shape == x3.shape
    assert jnp.allclose(out3.astype(jnp.float32), ref3, atol=2e-2, rtol=2e-2)

    print("KERNEL_OK")
</pallas_src>

<mosaic_0001>
module attributes {stable_mosaic.version = 11 : i64} {
  func.func @_layernorm_packed_kernel(%arg0: i32, %arg1: memref<8x128xf32, #tpu.memory_space<vmem>>, %arg2: memref<2x128xf32, #tpu.memory_space<vmem>>, %arg3: memref<128x128xf32, #tpu.memory_space<vmem>>, %arg4: memref<8x128xf32, #tpu.memory_space<vmem>>) attributes {dimension_semantics = [#tpu.dimension_semantics<parallel>], iteration_bounds = array<i64: 1>, scalar_prefetch = 0 : i64, scratch_operands = 0 : i64, tpu.core_type = #tpu.core_type<tc>, window_params = [{transform_indices = @transform_0, window_bounds = array<i64: 8, 128>}, {pipeline_mode = #tpu.pipeline_mode<synchronous>, transform_indices = @transform_1, window_bounds = array<i64: 2, 128>}, {pipeline_mode = #tpu.pipeline_mode<synchronous>, transform_indices = @transform_2, window_bounds = array<i64: 128, 128>}, {transform_indices = @transform_3, window_bounds = array<i64: 8, 128>}]} {
    %c0 = arith.constant 0 : index
    %c0_0 = arith.constant 0 : index
    %0 = vector.load %arg1[%c0, %c0_0] : memref<8x128xf32, #tpu.memory_space<vmem>>, vector<8x128xf32>
    %c0_1 = arith.constant 0 : index
    %c0_2 = arith.constant 0 : index
    %1 = vector.load %arg3[%c0_1, %c0_2] : memref<128x128xf32, #tpu.memory_space<vmem>>, vector<128x128xf32>
    %cst = arith.constant dense<0.000000e+00> : vector<8x128xf32>
    %2 = tpu.matmul %0, %1, %cst {dimension_numbers = #tpu.dot_dimension_numbers<[1], [0], [0], [1], [0, 0, 1, 1], [], []>} : vector<8x128xf32>, vector<128x128xf32>, vector<8x128xf32> -> vector<8x128xf32>
    %3 = arith.subf %0, %2 : vector<8x128xf32>
    %4 = arith.mulf %3, %3 : vector<8x128xf32>
    %cst_3 = arith.constant dense<0.000000e+00> : vector<8x128xf32>
    %5 = tpu.matmul %4, %1, %cst_3 {dimension_numbers = #tpu.dot_dimension_numbers<[1], [0], [0], [1], [0, 0, 1, 1], [], []>} : vector<8x128xf32>, vector<128x128xf32>, vector<8x128xf32> -> vector<8x128xf32>
    %cst_4 = arith.constant 9.99999996E-13 : f32
    %6 = vector.broadcast %cst_4 : f32 to vector<8x128xf32>
    %7 = arith.addf %5, %6 : vector<8x128xf32>
    %8 = math.rsqrt %7 : vector<8x128xf32>
    %9 = arith.mulf %3, %8 : vector<8x128xf32>
    %c0_5 = arith.constant 0 : index
    %c0_6 = arith.constant 0 : index
    %10 = vector.load %arg2[%c0_5, %c0_6] : memref<2x128xf32, #tpu.memory_space<vmem>>, vector<1x128xf32>
    %11 = vector.broadcast %10 : vector<1x128xf32> to vector<8x128xf32>
    %12 = arith.mulf %11, %9 : vector<8x128xf32>
    %c1 = arith.constant 1 : index
    %c0_7 = arith.constant 0 : index
    %13 = vector.load %arg2[%c1, %c0_7] : memref<2x128xf32, #tpu.memory_space<vmem>>, vector<1x128xf32>
    %14 = vector.broadcast %13 : vector<1x128xf32> to vector<8x128xf32>
    %15 = arith.addf %12, %14 : vector<8x128xf32>
    %c0_8 = arith.constant 0 : index
    %c0_9 = arith.constant 0 : index
    %16 = vector.load %arg4[%c0_8, %c0_9] : memref<8x128xf32, #tpu.memory_space<vmem>>, vector<8x128xf32>
    tpu.vector_store %arg4[%c0_8, %c0_9], %15 {strides = array<i32>} : memref<8x128xf32, #tpu.memory_space<vmem>>, vector<8x128xf32>,
    return
  }
  func.func @transform_0(%arg0: i32) -> (i32, i32) {
    %c0_i32 = arith.constant 0 : i32
    %c0_i32_0 = arith.constant 0 : i32
    return %arg0, %c0_i32 : i32, i32
  }
  func.func @transform_1(%arg0: i32) -> (i32, i32) {
    %c0_i32 = arith.constant 0 : i32
    %c0_i32_0 = arith.constant 0 : i32
    %c0_i32_1 = arith.constant 0 : i32
    return %c0_i32, %c0_i32_0 : i32, i32
  }
  func.func @transform_2(%arg0: i32) -> (i32, i32) {
    %c0_i32 = arith.constant 0 : i32
    %c0_i32_0 = arith.constant 0 : i32
    %c0_i32_1 = arith.constant 0 : i32
    return %c0_i32, %c0_i32_0 : i32, i32
  }
  func.func @transform_3(%arg0: i32) -> (i32, i32) {
    %c0_i32 = arith.constant 0 : i32
    %c0_i32_0 = arith.constant 0 : i32
    return %arg0, %c0_i32 : i32, i32
  }
}

</mosaic_0001>

<bundles_post_ra>
// kernel: tpu_custom_call.1
= control target key start
LH: loop header
LB: loop body
LE: loop exit
PB: predicated region body
PF: predicated region fallthrough
CT: control target
= control target key end

     0   :  { %8 = vsyncpa [#allocation3], 0  ;;  %s551_s0 = inlined_call_operand.hbm [shape: f32[4,128], index: 0, kind: input, shape index: {}]   ;;  %s552_s1 = inlined_call_operand.vmem [shape: f32[2,128], index: 1, kind: input, shape index: {}]   ;;  %s553_s2 = inlined_call_operand.hbm [shape: f32[128,128], index: 2, kind: input, shape index: {}]   ;;  %s554_s3 = inlined_call_operand.hbm [shape: f32[4,128], index: 3, kind: output, shape index: {}]  }
   0x1   :  { %9 = vsyncpa [#allocation6], 0 }
   0x2   :  { %10 = vsyncpa [#allocation4], 0 }
   0x3   :  { %15 = vsyncadd [#allocation3], 64  ;;  %s473_s12 = smov [#allocation2]   ;;  %s401_s16 = scalar_lea.hbm %s551_s0, 64 }
   0x4   :  { %s16_s13 = sshll.u32 %s473_s12, 4  ;;  %p402_p0 = scmp.ne.s32.totalorder %s551_s0, %s401_s16  ;;  %s17_s13 = int_to_ptr.vmem [resolvable:$true] %s16_s13 }
   0x5   :  { %p405_p1 = scmp.lt.u32.totalorder %s401_s16, %s551_s0 }
   0x7   :  { %p407_p2 = pnand %p405_p1, %p402_p0 }
   0x9   :  { %410 = shalt.err (!%p407_p2)
}
   0xa   :  { %s411_s21 = scalar_lea.vmem %s17_s13, 64  ;;  %s415_s22 = scalar_lea.vmem %s17_s13, 128 }
   0xb   :  { %p412_p3 = scmp.ne.s32.totalorder %s17_s13, %s411_s21  ;;  %p416_p4 = scmp.lt.s32.totalorder %s17_s13, %s17_s13 }
   0xc   :  { %p417_p5 = scmp.lt.s32.totalorder %s415_s22, %s411_s21 }
   0xe   :  { %p418_p6 = por %p417_p5, %p416_p4 }
  0x10   :  { %p419_p7 = pnand %p418_p6, %p412_p3 }
  0x12   :  { %422 = shalt.err (!%p419_p7)
}
  0x13   :  { %s474_s23 = smov 64   ;;  %s475_s24 = smov 4  }
  0x14   :  { %22 = dma.hbm_to_vmem [thread:$0]  %s551_s0, 64, %s17_s13, [#allocation3], %s474_s23, %s474_s23, %s475_s24  }
  0x15   :  { %s476_s27 = smov [#allocation5]   ;;  %s423_s4 = scalar_lea.hbm %s553_s2, 2048 }
  0x16   :  { %s30_s28 = sshll.u32 %s476_s27, 4  ;;  %p424_p8 = scmp.ne.s32.totalorder %s553_s2, %s423_s4  ;;  %s31_s28 = int_to_ptr.vmem [resolvable:$true] %s30_s28 }
  0x17   :  { %p427_p9 = scmp.lt.u32.totalorder %s423_s4, %s553_s2 }
  0x19   :  { %p429_p10 = pnand %p427_p9, %p424_p8 }
  0x1b   :  { %432 = shalt.err (!%p429_p10)
}
  0x1c   :  { %s433_s9 = scalar_lea.vmem %s31_s28, 2048  ;;  %p438_p12 = scmp.lt.s32.totalorder %s31_s28, %s31_s28 }
  0x1d   :  { %p434_p11 = scmp.ne.s32.totalorder %s31_s28, %s433_s9  ;;  %p439_p13 = scmp.lt.s32.totalorder %s433_s9, %s433_s9 }
  0x1f   :  { %p440_p0 = por %p439_p13, %p438_p12 }
  0x21   :  { %p441_p1 = pnand %p440_p0, %p434_p11 }
  0x23   :  { %444 = shalt.err (!%p441_p1)
}
  0x24   :  { %s477_s0 = smov 128   ;;  %s478_s10 = smov 8  }
  0x25   :  { %36 = dma.hbm_to_vmem [thread:$0]  %s553_s2, 2048, %s31_s28, [#allocation6], %s477_s0, %s477_s0, %s478_s10  }
  0x26   :  { %467 = dma.done.wait [#allocation3], 128  }
  0x27   :  { %468 = vsyncadd [#allocation3], 4294967168 }
  0x28   :  { %469 = dma.done.wait [#allocation6], 2048  }
  0x29   :  { %470 = vsyncadd [#allocation6], 4294965248  ;;  %v479_v0 = vmov 0.0|0.0   ;;  %vm480_vm0 = vmmov 0   ;;  %v481_v1 = vmov 0.0   ;;  %v44_v2 = vld [vmem:[#allocation5] sm:$0xff] }
  0x2a   :  { %341 = vmatprep.subr.bf16.mxu0 %v479_v0  ;;  %303 = vmatprep.mubr.msk.f32.mxu0 %vm480_vm0, %v481_v1  ;;  %v45_v3 = vld [vmem:[#allocation5 + $0x8] sm:$0xff]  ;;  %v46_v4 = vld [vmem:[#allocation5 + $0x10] sm:$0xff]  ;;  %v47_v6 = vld [vmem:[#allocation5 + $0x18] sm:$0xff] }
  0x2b   :  { %365 = vmatprep.subr.bf16.mxu1 %v479_v0  ;;  %338 = vmatprep.mubr.msk.f32.mxu1 %vm480_vm0, %v481_v1  ;;  %v342_v5 = vpack.c.bf16 %v45_v3, %v44_v2  ;;  %v345_v7 = vpack.c.bf16 %v47_v6, %v46_v4  ;;  %v48_v8 = vld [vmem:[#allocation5 + $0x20] sm:$0xff]  ;;  %v49_v9 = vld [vmem:[#allocation5 + $0x28] sm:$0xff]  ;;  %v50_v11 = vld [vmem:[#allocation5 + $0x30] sm:$0xff] }
  0x2c   :  { %v348_v10 = vpack.c.bf16 %v49_v9, %v48_v8  ;;  %v51_v12 = vld [vmem:[#allocation5 + $0x38] sm:$0xff]  ;;  %v52_v14 = vld [vmem:[#allocation5 + $0x40] sm:$0xff]  ;;  %v53_v15 = vld [vmem:[#allocation5 + $0x48] sm:$0xff] }
  0x2d   :  { %343 = vmatpush3.bf16.msra.mxu0 %v342_v5  ;;  %367 = vmatpush3.bf16.msra.mxu1 %v342_v5  ;;  %v351_v13 = vpack.c.bf16 %v51_v12, %v50_v11  ;;  %v354_v16 = vpack.c.bf16 %v53_v15, %v52_v14  ;;  %v54_v17 = vld [vmem:[#allocation5 + $0x50] sm:$0xff]  ;;  %v55_v18 = vld [vmem:[#allocation5 + $0x58] sm:$0xff]  ;;  %v56_v20 = vld [vmem:[#allocation5 + $0x60] sm:$0xff] }
  0x2e   :  { %344 = vmatprep.subr.bf16.mxu0 %v479_v0  ;;  %368 = vmatprep.subr.bf16.mxu1 %v479_v0  ;;  %v357_v19 = vpack.c.bf16 %v55_v18, %v54_v17  ;;  %v57_v21 = vld [vmem:[#allocation5 + $0x68] sm:$0xff]  ;;  %v58_v23 = vld [vmem:[#allocation5 + $0x70] sm:$0xff]  ;;  %v59_v24 = vld [vmem:[#allocation5 + $0x78] sm:$0xff] }
  0x2f   :  { %v360_v22 = vpack.c.bf16 %v57_v21, %v56_v20  ;;  %v363_v25 = vpack.c.bf16 %v59_v24, %v58_v23  ;;  %v43_v26 = vld [vmem:[#allocation2] sm:$0xff] }
  0x30   :  { %v235_v35 = vld [vmem:[%s552_s1] ss:$0 sm:$0xff]  ;;  %v236_v37 = vld [vmem:[%s552_s1 + $0x1] ss:$0 sm:$0xff] }
  0x31   :  { %346 = vmatpush3.bf16.msra.mxu0 %v345_v7  ;;  %370 = vmatpush3.bf16.msra.mxu1 %v345_v7 }
  0x32   :  { %347 = vmatprep.subr.bf16.mxu0 %v479_v0  ;;  %371 = vmatprep.subr.bf16.mxu1 %v479_v0 }
  0x35   :  { %349 = vmatpush3.bf16.msra.mxu0 %v348_v10  ;;  %373 = vmatpush3.bf16.msra.mxu1 %v348_v10 }
  0x36   :  { %350 = vmatprep.subr.bf16.mxu0 %v479_v0  ;;  %374 = vmatprep.subr.bf16.mxu1 %v479_v0 }
  0x39   :  { %352 = vmatpush3.bf16.msra.mxu0 %v351_v13  ;;  %376 = vmatpush3.bf16.msra.mxu1 %v351_v13 }
  0x3a   :  { %353 = vmatprep.subr.bf16.mxu0 %v479_v0  ;;  %377 = vmatprep.subr.bf16.mxu1 %v479_v0 }
  0x3d   :  { %355 = vmatpush3.bf16.msra.mxu0 %v354_v16  ;;  %379 = vmatpush3.bf16.msra.mxu1 %v354_v16 }
  0x3e   :  { %356 = vmatprep.subr.bf16.mxu0 %v479_v0  ;;  %380 = vmatprep.subr.bf16.mxu1 %v479_v0 }
  0x41   :  { %358 = vmatpush3.bf16.msra.mxu0 %v357_v19  ;;  %382 = vmatpush3.bf16.msra.mxu1 %v357_v19 }
  0x42   :  { %359 = vmatprep.subr.bf16.mxu0 %v479_v0  ;;  %383 = vmatprep.subr.bf16.mxu1 %v479_v0 }
  0x45   :  { %361 = vmatpush3.bf16.msra.mxu0 %v360_v22  ;;  %385 = vmatpush3.bf16.msra.mxu1 %v360_v22 }
  0x46   :  { %362 = vmatprep.subr.bf16.mxu0 %v479_v0  ;;  %386 = vmatprep.subr.bf16.mxu1 %v479_v0 }
  0x49   :  { %364 = vmatpush3.bf16.msra.mxu0 %v363_v25  ;;  %388 = vmatpush3.bf16.msra.mxu1 %v363_v25 }
  0x4c   :  { %304 = vmatmul.mubr.f32.vlgmr.msra.gmra.mrb[0].mxu0 %v43_v26 }
 0x11f   :  { %v126_v27 = vpop.f32.mrb[0].mxu0 }
 0x120   :  { %v130_v28 = vsub.f32 %v43_v26, %v126_v27  ;;  %v305_v29 = vpop.f32.mrb[1].mxu0 }
 0x122   :  { %v131_v30 = vmul.f32 %v130_v28, %v130_v28 }
 0x124   :  { %339 = vmatmul.mubr.f32.vlgmr.msra.gmra.mrb[0].mxu1 %v131_v30 }
 0x1f7   :  { %v198_v31 = vpop.f32.mrb[0].mxu1 }
 0x1f8   :  { %v199_v32 = vadd.f32 1e-12, %v198_v31  ;;  %v340_v33 = vpop.f32.mrb[1].mxu1 }
 0x1fa   :  { %399 = vrsqrt.f32 %v199_v32 }
 0x204   :  { %v400_v34 = vpop.eup %399 }
 0x205   :  { %v203_v36 = vmul.f32 %v400_v34, %v130_v28 }
 0x207   :  { %v209_v38 = vmul.f32 %v235_v35, %v203_v36 }
 0x209   :  { %v215_v39 = vadd.f32 %v236_v37, %v209_v38 }
 0x20b   :  { %216 = vst [vmem:[#allocation7] sm:$0xff] %v215_v39 }
 0x20c   :  { %221 = vsyncadd [#allocation4], 64  ;;  %s482_s16 = smov [#allocation7]  }
 0x20d   :  { %s222_s17 = sshll.u32 %s482_s16, 4  ;;  %s223_s17 = int_to_ptr.vmem [resolvable:$true] %s222_s17 }
 0x20e   :  { %s445_s18 = scalar_lea.vmem %s223_s17, 64  ;;  %s449_s19 = scalar_lea.vmem %s223_s17, 128 }
 0x20f   :  { %p446_p2 = scmp.ne.s32.totalorder %s223_s17, %s445_s18  ;;  %p450_p3 = scmp.lt.s32.totalorder %s223_s17, %s223_s17 }
 0x210   :  { %p451_p4 = scmp.lt.s32.totalorder %s449_s19, %s445_s18 }
 0x212   :  { %p452_p5 = por %p451_p4, %p450_p3 }
 0x214   :  { %p453_p6 = pnand %p452_p5, %p446_p2 }
 0x216   :  { %456 = shalt.err (!%p453_p6)
}
 0x217   :  { %s457_s22 = scalar_lea.hbm %s554_s3, 64 }
 0x218   :  { %p458_p7 = scmp.ne.s32.totalorder %s554_s3, %s457_s22  ;;  %p461_p8 = scmp.lt.u32.totalorder %s457_s22, %s554_s3 }
 0x21a   :  { %p463_p9 = pnand %p461_p8, %p458_p7 }
 0x21c   :  { %466 = shalt.err (!%p463_p9)
}
 0x21d   :  { %228 = dma.vmem_to_hbm [thread:$0]  %s223_s17, 64, %s554_s3, [#allocation4], %s474_s23, %s474_s23, %s475_s24  }
 0x21e   :  { %471 = dma.done.wait [#allocation4], 128  }
 0x21f   :  { %472 = vsyncadd [#allocation4], 4294967168 }
 0x220   :  { %232 = vsyncpa [#allocation3], 1 }
 0x221   :  { %233 = vsyncpa [#allocation6], 1 }
 0x222   :  { %234 = vsyncpa [#allocation4], 1 }

</bundles_post_ra>
